<compile_context>
chip_gen: v7x
topology: tpu7x:2x2x1
jax: 0.10.0
libtpu: 0.0.40
codegen_flags: <defaults>
</compile_context>

<pallas_src>
import jax
import jax.numpy as jnp
from jax.experimental import pallas as pl
from jax.experimental.pallas import tpu as pltpu

_LANES = 128
_TARGET_TILE_BYTES = 1 << 20          # ~1 MiB per input tile (~85% HBM roofline)
_VMEM_LIMIT_BYTES = 32 * 1024 * 1024  # explicit scoped-VMEM budget (safe on v5e/v6e/v7x)


def _fusion_kernel(enc_ref, up_ref, out_ref):
    # enc_ref, up_ref : (1, tr, 128)
    # out_ref         : (1, 2, tr, 128)  half 0 = subtract, half 1 = pass-through
    out_ref[0, 0, :, :] = up_ref[0] - enc_ref[0]
    out_ref[0, 1, :, :] = up_ref[0]


def _round_up(x, m):
    return ((x + m - 1) // m) * m


def _pick_row_tile(n, rows, itemsize):
    """Sublane-tile for the merged (C*H*W)/128 axis."""
    # Dense sublane multiple per dtype (f32: 8, bf16: 16, int8/fp8: 32).
    sub = max(8, 32 // itemsize)
    if rows <= sub:
        return rows                      # full extent: always a legal block
    tr = max(sub, (_TARGET_TILE_BYTES // (_LANES * itemsize)) // sub * sub)
    tr = min(tr, _round_up(rows, sub))
    if n == 1:
        # v7x megacore: guarantee >= 2 grid steps so both TensorCores get work.
        tr = min(tr, _round_up(pl.cdiv(rows, 2), sub))
    return tr


def fusion_pallas(encoder_block, upsample_block):
    """encoder_block, upsample_block: (N, C, H, W) -> (N, 2C, H, W)."""
    assert encoder_block.shape == upsample_block.shape
    assert encoder_block.dtype == upsample_block.dtype
    n, c, h, w = encoder_block.shape
    dtype = upsample_block.dtype
    itemsize = jnp.dtype(dtype).itemsize

    l = c * h * w
    lp = _round_up(l, _LANES)

    enc = encoder_block.reshape(n, l)
    up = upsample_block.reshape(n, l)
    if lp != l:
        # Rare fallback: pad the merged axis to a lane multiple (one extra
        # pad/slice round-trip) so the kernel stays lane-dense and unmasked.
        enc = jnp.pad(enc, ((0, 0), (0, lp - l)))
        up = jnp.pad(up, ((0, 0), (0, lp - l)))

    rows = lp // _LANES
    enc = enc.reshape(n, rows, _LANES)
    up = up.reshape(n, rows, _LANES)

    tr = _pick_row_tile(n, rows, itemsize)
    grid = (n, pl.cdiv(rows, tr))

    cost = pl.CostEstimate(
        flops=n * c * h * w,                             # one subtract / element
        transcendentals=0,
        bytes_accessed=4 * n * c * h * w * itemsize,     # 2 reads + 2 writes
    )

    out4 = pl.pallas_call(
        _fusion_kernel,
        out_shape=jax.ShapeDtypeStruct((n, 2, rows, _LANES), dtype),
        grid_spec=pltpu.PrefetchScalarGridSpec(
            num_scalar_prefetch=0,
            grid=grid,
            in_specs=[
                pl.BlockSpec((1, tr, _LANES), lambda b, r: (b, r, 0)),
                pl.BlockSpec((1, tr, _LANES), lambda b, r: (b, r, 0)),
            ],
            out_specs=pl.BlockSpec((1, 2, tr, _LANES), lambda b, r: (b, 0, r, 0)),
        ),
        compiler_params=pltpu.CompilerParams(
            dimension_semantics=("parallel", "parallel"),
            vmem_limit_bytes=_VMEM_LIMIT_BYTES,
        ),
        cost_estimate=cost,
    )(enc, up)

    if lp != l:
        out = out4.reshape(n, 2, lp)[:, :, :l]
    else:
        out = out4
    # (N, 2, C*H*W) contiguous == (N, 2C, H, W): exactly cat([sub, up], dim=1).
    return out.reshape(n, 2 * c, h, w)


def fusion_ref(encoder_block, upsample_block):
    subtract = upsample_block - encoder_block
    return jnp.concatenate([subtract, upsample_block], axis=1)


if __name__ == "__main__":
    key = jax.random.PRNGKey(0)
    k1, k2 = jax.random.split(key)

    N, C, H, W = 2, 4, 16, 16
    encoder_block = jax.random.normal(k1, (N, C, H, W), dtype=jnp.float32)
    upsample_block = jax.random.normal(k2, (N, C, H, W), dtype=jnp.float32)

    out = fusion_pallas(encoder_block, upsample_block)
    out = jax.block_until_ready(out)

    ref = fusion_ref(encoder_block, upsample_block)
    assert out.shape == (N, 2 * C, H, W), out.shape
    assert jnp.allclose(out, ref, atol=1e-6, rtol=1e-6), "mismatch vs reference"

    print("KERNEL_OK")
</pallas_src>

<mosaic_0001>
module attributes {stable_mosaic.version = 11 : i64} {
  func.func @_fusion_kernel(%arg0: i32, %arg1: i32, %arg2: memref<1x8x128xf32, #tpu.memory_space<vmem>>, %arg3: memref<1x8x128xf32, #tpu.memory_space<vmem>>, %arg4: memref<1x2x8x128xf32, #tpu.memory_space<vmem>>) attributes {dimension_semantics = [#tpu.dimension_semantics<parallel>, #tpu.dimension_semantics<parallel>], iteration_bounds = array<i64: 2, 1>, scalar_prefetch = 0 : i64, scratch_operands = 0 : i64, tpu.core_type = #tpu.core_type<tc>, window_params = [{transform_indices = @transform_0, window_bounds = array<i64: 1, 8, 128>}, {transform_indices = @transform_1, window_bounds = array<i64: 1, 8, 128>}, {transform_indices = @transform_2, window_bounds = array<i64: 1, 2, 8, 128>}]} {
    %c0 = arith.constant 0 : index
    %c0_0 = arith.constant 0 : index
    %c0_1 = arith.constant 0 : index
    %0 = vector.load %arg3[%c0, %c0_0, %c0_1] : memref<1x8x128xf32, #tpu.memory_space<vmem>>, vector<1x8x128xf32>
    %1 = vector.shape_cast %0 : vector<1x8x128xf32> to vector<8x128xf32>
    %c0_2 = arith.constant 0 : index
    %c0_3 = arith.constant 0 : index
    %c0_4 = arith.constant 0 : index
    %2 = vector.load %arg2[%c0_2, %c0_3, %c0_4] : memref<1x8x128xf32, #tpu.memory_space<vmem>>, vector<1x8x128xf32>
    %3 = vector.shape_cast %2 : vector<1x8x128xf32> to vector<8x128xf32>
    %4 = arith.subf %1, %3 : vector<8x128xf32>
    %c0_5 = arith.constant 0 : index
    %c0_6 = arith.constant 0 : index
    %c0_7 = arith.constant 0 : index
    %c0_8 = arith.constant 0 : index
    %5 = vector.load %arg4[%c0_5, %c0_6, %c0_7, %c0_8] : memref<1x2x8x128xf32, #tpu.memory_space<vmem>>, vector<1x1x8x128xf32>
    %6 = vector.shape_cast %5 : vector<1x1x8x128xf32> to vector<8x128xf32>
    %7 = vector.shape_cast %4 : vector<8x128xf32> to vector<1x1x8x128xf32>
    tpu.vector_store %arg4[%c0_5, %c0_6, %c0_7, %c0_8], %7 {strides = array<i32>} : memref<1x2x8x128xf32, #tpu.memory_space<vmem>>, vector<1x1x8x128xf32>,
    %c0_9 = arith.constant 0 : index
    %c0_10 = arith.constant 0 : index
    %c0_11 = arith.constant 0 : index
    %8 = vector.load %arg3[%c0_9, %c0_10, %c0_11] : memref<1x8x128xf32, #tpu.memory_space<vmem>>, vector<1x8x128xf32>
    %9 = vector.shape_cast %8 : vector<1x8x128xf32> to vector<8x128xf32>
    %c0_12 = arith.constant 0 : index
    %c1 = arith.constant 1 : index
    %c0_13 = arith.constant 0 : index
    %c0_14 = arith.constant 0 : index
    %10 = vector.load %arg4[%c0_12, %c1, %c0_13, %c0_14] : memref<1x2x8x128xf32, #tpu.memory_space<vmem>>, vector<1x1x8x128xf32>
    %11 = vector.shape_cast %10 : vector<1x1x8x128xf32> to vector<8x128xf32>
    %12 = vector.shape_cast %9 : vector<8x128xf32> to vector<1x1x8x128xf32>
    tpu.vector_store %arg4[%c0_12, %c1, %c0_13, %c0_14], %12 {strides = array<i32>} : memref<1x2x8x128xf32, #tpu.memory_space<vmem>>, vector<1x1x8x128xf32>,
    return
  }
  func.func @transform_0(%arg0: i32, %arg1: i32) -> (i32, i32, i32) {
    %c0_i32 = arith.constant 0 : i32
    %c0_i32_0 = arith.constant 0 : i32
    return %arg0, %arg1, %c0_i32 : i32, i32, i32
  }
  func.func @transform_1(%arg0: i32, %arg1: i32) -> (i32, i32, i32) {
    %c0_i32 = arith.constant 0 : i32
    %c0_i32_0 = arith.constant 0 : i32
    return %arg0, %arg1, %c0_i32 : i32, i32, i32
  }
  func.func @transform_2(%arg0: i32, %arg1: i32) -> (i32, i32, i32, i32) {
    %c0_i32 = arith.constant 0 : i32
    %c0_i32_0 = arith.constant 0 : i32
    %c0_i32_1 = arith.constant 0 : i32
    return %arg0, %c0_i32, %arg1, %c0_i32_0 : i32, i32, i32, i32
  }
}

</mosaic_0001>

<bundles_post_ra>
// kernel: tpu_custom_call.1
= control target key start
LH: loop header
LB: loop body
LE: loop exit
PB: predicated region body
PF: predicated region fallthrough
CT: control target
= control target key end

     0   :  { %7 = vsyncpa [#allocation3], 0  ;;  %s825_s0 = inlined_call_operand.hbm [shape: f32[2,8,128], index: 0, kind: input, shape index: {}]   ;;  %s826_s1 = inlined_call_operand.hbm [shape: f32[2,8,128], index: 1, kind: input, shape index: {}]   ;;  %s827_s2 = inlined_call_operand.hbm [shape: f32[2,2,8,128], index: 2, kind: output, shape index: {}]  }
   0x1   :  { %9 = vsyncpa [#allocation3 + $0x1], 0 }
   0x2   :  { %10 = vsyncpa [#allocation6], 0 }
   0x3   :  { %12 = vsyncpa [#allocation6 + $0x1], 0 }
   0x4   :  { %13 = vsyncpa [#allocation4], 0 }
   0x5   :  { %15 = vsyncpa [#allocation4 + $0x1], 0  ;;  %s602_s9 = smov 0   ;;  %s604_s10 = smov 0  }
   0x6   :  { %s606_s11 = smov 0   ;;  %s608_s12 = smov 0  }
   0x7   :  { %s610_s13 = smov 0   ;;  %s612_s14 = smov 0  }
   0x8 LB: > { %s346_s15 = sadd.s32 4294967295, %s580_s14   ;;  %s347_s16 = sadd.s32 4294967294, %s580_s14   ;;  %s580_s14 = sphi %s612_s14, %s21_s14   ;;  %s576_s13 = sphi %s610_s13, %s847_s13   ;;  %s572_s12 = sphi %s608_s12, %s846_s12   ;;  %s568_s11 = sphi %s606_s11, %s845_s11   ;;  %s564_s10 = sphi %s604_s10, %s844_s10   ;;  %s560_s9 = sphi %s602_s9, %s843_s9  }
   0x9   : > { %s33_s17 = sadd.s32 1, %s576_s13  ;;  %s42_s18 = sadd.s32 1, %s568_s11 }
   0xa   : > { %p35_p0 = scmp.ge.s32.totalorder %s33_s17, 2  ;;  %p49_p1 = scmp.ne.s32.totalorder %s568_s11, %s564_s10 }
   0xb   : > { %p50_p2 = scmp.eq.s32.totalorder %s580_s14, 0  ;;  %p55_p3 = scmp.ne.s32.totalorder %s564_s10, %s560_s9 }
   0xc   : > { %s849_s17 = smov (%p35_p0, %s33_s17), 0  ;;  %p56_p5 = scmp.eq.s32.totalorder %s346_s15, 0 }
   0xd   : > { %p643_p4 = por %p50_p2, %p49_p1  ;;  %s37_s20 = ssub.s32 %s576_s13, %s849_s17 }
   0xe   : > { %p109_p6 = scmp.eq.s32.totalorder %s346_s15, 1  ;;  %p40_p7 = scmp.eq.s32.totalorder %s37_s20, 0 }
   0xf   : > { %p649_p8 = por %p56_p5, %p55_p3  ;;  %p115_p10 = scmp.eq.s32.totalorder %s347_s16, 1 }
  0x10   : > { %p653_p9 = por %p109_p6, %p49_p1  ;;  %p382_p13 = scmp.lt.s32.totalorder %s580_s14, 2 }
  0x11   : > { %s831_s21 = scalar_select %p649_p8, 1, 0 }
  0x12   : > { %s832_s22 = scalar_select %p653_p9, 1, 0 }
  0x13   : > { %s658_s23 = scalar_select %p40_p7, %s568_s11, %s42_s18  }
  0x14   : > { %p660_p11 = por %p115_p10, %p55_p3  ;;  %s667_s25 = sand.u32 1, %s568_s11  }
  0x15   : > { %s350_s26 = sshll.u32 %s667_s25, 3  ;;  %s351_s27 = sshll.u32 %s576_s13, 7 }
  0x16   : > { %s833_s24 = scalar_select %p660_p11, 1, 0 }
  0x17   : > { %s676_s30 = scalar_lea.hbm %s825_s0, %s351_s27  ;;  %s139_s3 = scalar_lea.vmem [#allocation2], %s350_s26 }
  0x18   : > { %s147_s4 = sshll.u32 %s139_s3, 4  ;;  %p684_p0 = pnand %p382_p13, %p643_p4  ;;  %s680_s4 = int_to_ptr.vmem [resolvable:$true] %s147_s4 }
  0x19   : > { %s136_s6 = scalar_lea.sflag [#allocation3], %s667_s25  ;;  %s434_s7 = scalar_lea.hbm %s676_s30, 128 }
  0x1a   : > { %p435_p3 = scmp.ne.s32.totalorder %s676_s30, %s434_s7  ;;  %p436_p5 = pneg %p684_p0 }
  0x1b   : > { %s439_s16 = scalar_lea.hbm %s825_s0, 256  ;;  %p440_p4 = scmp.lt.u32.totalorder %s676_s30, %s825_s0 }
  0x1c   : > { %p437_p6 = pnand %p436_p5, %p435_p3  ;;  %p441_p10 = scmp.lt.u32.totalorder %s439_s16, %s434_s7 }
  0x1d   : > { %p443_p12 = scmp.lt.u32.totalorder %s434_s7, %s676_s30 }
  0x1e   : > { %p438_p7 = pneg %p437_p6  ;;  %p442_p13 = por %p441_p10, %p440_p4 }
  0x20   : > { %p444_p1 = por %p443_p12, %p442_p13 }
  0x22   : > { %p445_p2 = pnand %p444_p1, %p438_p7 }
  0x24   : > { %448 = shalt.err (!%p445_p2)
}
  0x25   : > { %s449_s20 = scalar_lea.vmem %s680_s4, 128  ;;  %s582_s28 = smov [#allocation2]  }
  0x26   : > { %p450_p3 = scmp.ne.s32.totalorder %s680_s4, %s449_s20  ;;  %s454_s29 = sshll.u32 %s582_s28, 4  ;;  %s455_s29 = int_to_ptr.vmem [resolvable:$false] %s454_s29 }
  0x27   : > { %s456_s3 = scalar_lea.vmem %s455_s29, 256  ;;  %p457_p9 = scmp.lt.s32.totalorder %s680_s4, %s455_s29 }
  0x28   : > { %p452_p6 = pnand %p450_p3, %p436_p5  ;;  %p458_p4 = scmp.lt.s32.totalorder %s456_s3, %s449_s20 }
  0x2a   : > { %p453_p11 = pneg %p452_p6  ;;  %p459_p10 = por %p458_p4, %p457_p9 }
  0x2c   : > { %p460_p12 = pnand %p459_p10, %p453_p11 }
  0x2e   : > { %463 = shalt.err (!%p460_p12)
}
  0x2f   : > { %374 = dma.hbm_to_vmem [thread:$0]  (!%p684_p0), %s676_s30, 128, %s680_s4, %s136_s6  }
  0x30   : > { %p835_p1 = scmp.lt.s32.totalorder %s580_s14, 3  ;;  %p836_p2 = scmp.ge.s32.totalorder %s580_s14, 1 }
  0x31   : > { %s729_s16 = scalar_lea.hbm %s826_s1, %s351_s27  ;;  %s158_s18 = scalar_lea.vmem [#allocation5], %s350_s26 }
  0x32   : > { %p720_p7 = pnand %p836_p2, %p835_p1  ;;  %s166_s19 = sshll.u32 %s158_s18, 4  ;;  %s167_s19 = int_to_ptr.vmem [resolvable:$true] %s166_s19 }
  0x33   : > { %s155_s30 = scalar_lea.sflag [#allocation6], %s667_s25  ;;  %s464_s4 = scalar_lea.hbm %s729_s16, 128 }
  0x34   : > { %s837_s7 = scalar_select %p720_p7, 1, 0 }
  0x35   : > { %p465_p9 = scmp.ne.s32.totalorder %s729_s16, %s464_s4  ;;  %s469_s27 = scalar_lea.hbm %s826_s1, 256 }
  0x36   : > { %p470_p3 = scmp.lt.u32.totalorder %s729_s16, %s826_s1  ;;  %p471_p6 = scmp.lt.u32.totalorder %s469_s27, %s464_s4 }
  0x37   : > { %p467_p11 = pnand %p465_p9, %p436_p5  ;;  %p473_p10 = scmp.lt.u32.totalorder %s464_s4, %s729_s16 }
  0x38   : > { %p472_p4 = por %p471_p6, %p470_p3 }
  0x39   : > { %p468_p13 = pneg %p467_p11 }
  0x3a   : > { %p474_p12 = por %p473_p10, %p472_p4 }
  0x3c   : > { %p475_p1 = pnand %p474_p12, %p468_p13 }
  0x3e   : > { %478 = shalt.err (!%p475_p1)
}
  0x3f   : > { %s479_s25 = scalar_lea.vmem %s167_s19, 128  ;;  %s583_s26 = smov [#allocation5]  }
  0x40   : > { %p480_p2 = scmp.ne.s32.totalorder %s167_s19, %s479_s25  ;;  %s484_s3 = sshll.u32 %s583_s26, 4  ;;  %s485_s3 = int_to_ptr.vmem [resolvable:$false] %s484_s3 }
  0x41   : > { %s486_s8 = scalar_lea.vmem %s485_s3, 256  ;;  %p487_p8 = scmp.lt.s32.totalorder %s167_s19, %s485_s3 }
  0x42   : > { %p482_p9 = pnand %p480_p2, %p436_p5  ;;  %p488_p7 = scmp.lt.s32.totalorder %s486_s8, %s479_s25 }
  0x44   : > { %p483_p11 = pneg %p482_p9  ;;  %p489_p3 = por %p488_p7, %p487_p8 }
  0x46   : > { %p490_p6 = pnand %p489_p3, %p483_p11 }
  0x48   : > { %493 = shalt.err (!%p490_p6)
}
  0x49   : > { %377 = dma.hbm_to_vmem [thread:$0]  (!%p684_p0), %s729_s16, 128, %s167_s19, %s155_s30  }
  0x4a   : > { %p838_p13 = scmp.ne.s32.totalorder %s837_s7, 0 }
  0x4b   : > { %s756_s15 = sand.u32 (!%p838_p13), 1, %s564_s10   ;;  %p839_p5 = scmp.ne.s32.totalorder (!%p838_p13), %s831_s21, 0 }
  0x4c   : > { %175 = sbr.rel (%p838_p13) target bundleno = 113 (0x71), region = 28  ;;  %s355_s18 = sshll.u32 (!%p838_p13), %s756_s15, 3 }
  0x4d   : > { %s178_s4 = scalar_lea.sflag (!%p838_p13), [#allocation3], %s756_s15  ;;  %s181_s6 = scalar_lea.vmem (!%p838_p13), [#allocation2], %s355_s18 }
  0x53   : > { %547 = dma.done.wait (%p839_p5), %s178_s4, 128  }
  0x54   : > { %549 = vsyncadd (%p839_p5), %s178_s4, 4294967168  ;;  %s187_s5 = scalar_lea.sflag [#allocation6], %s756_s15  ;;  %s190_s16 = scalar_lea.vmem [#allocation5], %s355_s18 }
  0x55   : > { %551 = dma.done.wait (%p839_p5), %s187_s5, 128  }
  0x56   : > { %553 = vsyncadd (%p839_p5), %s187_s5, 4294967168  ;;  %s357_s7 = sshll.u32 %s756_s15, 4  ;;  %s364_s20 = sshll.u32 %s572_s12, 8  ;;  %v216_v0 = vld [vmem:[%s190_s16] sm:$0xff]  ;;  %v217_v1 = vld [vmem:[%s181_s6] sm:$0xff] }
  0x57   : > { %s215_s19 = scalar_lea.vmem [#allocation7], %s357_s7  ;;  %s776_s21 = scalar_lea.hbm %s827_s2, %s364_s20  ;;  %v218_v2 = vsub.f32 %v216_v0, %v217_v1 }
  0x58   : > { %s238_s30 = sshll.u32 %s215_s19, 4  ;;  %358 = vst [vmem:[%s215_s19 + $0x8] sm:$0xff] %v216_v0  ;;  %s224_s29 = scalar_lea.sflag [#allocation4], %s756_s15  ;;  %s771_s30 = int_to_ptr.vmem [resolvable:$true] %s238_s30 }
  0x59   : > { %219 = vst [vmem:[%s215_s19] sm:$0xff] %v218_v2  ;;  %s494_s25 = scalar_lea.vmem %s771_s30, 256  ;;  %p840_p0 = scmp.ne.s32.totalorder %s832_s22, 0 }
  0x5a   : > { %p495_p8 = scmp.ne.s32.totalorder %s771_s30, %s494_s25  ;;  %s584_s12 = smov [#allocation7]  }
  0x5b   : > { %s498_s26 = sshll.u32 %s584_s12, 4  ;;  %s499_s26 = int_to_ptr.vmem [resolvable:$false] %s498_s26 }
  0x5c   : > { %p496_p7 = pnand %p495_p8, %p840_p0  ;;  %s500_s3 = scalar_lea.vmem %s499_s26, 512 }
  0x5d   : > { %p501_p10 = scmp.lt.s32.totalorder %s771_s30, %s499_s26  ;;  %p502_p12 = scmp.lt.s32.totalorder %s500_s3, %s494_s25 }
  0x5e   : > { %p497_p4 = pneg %p496_p7 }
  0x5f   : > { %p503_p1 = por %p502_p12, %p501_p10 }
  0x61   : > { %p504_p2 = pnand %p503_p1, %p497_p4 }
  0x63   : > { %507 = shalt.err (!%p504_p2)
}
  0x64   : > { %s508_s8 = scalar_lea.hbm %s776_s21, 256  ;;  %s512_s6 = scalar_lea.hbm %s827_s2, 512 }
  0x65   : > { %p509_p9 = scmp.ne.s32.totalorder %s776_s21, %s508_s8  ;;  %p513_p6 = scmp.lt.u32.totalorder %s776_s21, %s827_s2 }
  0x66   : > { %p514_p13 = scmp.lt.u32.totalorder %s512_s6, %s508_s8  ;;  %p516_p8 = scmp.lt.u32.totalorder %s508_s8, %s776_s21 }
  0x67   : > { %p510_p11 = pnand %p509_p9, %p840_p0 }
  0x68   : > { %p515_p5 = por %p514_p13, %p513_p6 }
  0x69   : > { %p511_p3 = pneg %p510_p11 }
  0x6a   : > { %p517_p7 = por %p516_p8, %p515_p5 }
  0x6c   : > { %p518_p4 = pnand %p517_p7, %p511_p3 }
  0x6e   : > { %521 = shalt.err (!%p518_p4)
}
  0x6f   : > { %s585_s7 = smov 128   ;;  %s586_s19 = smov 8  }
  0x70   : > { %369 = dma.vmem_to_hbm [thread:$0]  (%p840_p0), %s771_s30, 256, %s776_s21, %s224_s29, %s585_s7, %s585_s7, %s586_s19  }
  0x71 PF: > { %s253_s20 = sand.u32 1, %s560_s9   ;;  %p841_p10 = scmp.ne.s32.totalorder %s833_s24, 0 }
  0x72   : > { %p842_p12 = scmp.ge.s32.totalorder %s580_s14, 2  ;;  %s254_s27 = scalar_lea.sflag [#allocation4], %s253_s20 }
  0x74   : > { %p379_p1 = pnand %p842_p12, %p841_p10 }
  0x76   : > { %555 = dma.done.wait (!%p379_p1), %s254_s27, 256  }
  0x77   : > { %557 = vsyncadd (!%p379_p1), %s254_s27, 4294967040  ;;  %s21_s14 = sadd.s32 1, %s580_s14   ;;  %s843_s9 = smov %s564_s10 }
  0x78   : > { %p18_p2 = scmp.ge.s32.totalorder %s21_s14, 4   ;;  %s844_s10 = smov %s568_s11 }
  0x79   : > { %s845_s11 = smov %s658_s23  ;;  %s846_s12 = smov %s576_s13 }
  0x7a   : > { %s847_s13 = smov %s849_s17  ;;  %20 = sbr.rel (!%p18_p2) target bundleno = 8 (0x8), region = 87 }
  0x81   :  { %259 = vsyncpa [#allocation3], 1 }
  0x82   :  { %261 = vsyncpa [#allocation3 + $0x1], 1 }
  0x83   :  { %262 = vsyncpa [#allocation6], 1 }
  0x84   :  { %264 = vsyncpa [#allocation6 + $0x1], 1 }
  0x85   :  { %265 = vsyncpa [#allocation4], 1 }
  0x86   :  { %267 = vsyncpa [#allocation4 + $0x1], 1 }

</bundles_post_ra>
